<compile_context>
chip_gen: v6e
topology: v6e:2x2x1
jax: 0.10.0
libtpu: 0.0.40
codegen_flags: <defaults>
</compile_context>

<pallas_src>
import functools

import jax
import jax.numpy as jnp
from jax.experimental import pallas as pl
from jax.experimental.pallas import tpu as pltpu


def _round_up(n: int, m: int) -> int:
    return ((n + m - 1) // m) * m


def _make_kernel(normalize_flag: bool, compute_dtype):
    def enc_dec_kernel(x_ref, we_ref, be_ref, wd_ref, bd_ref, out_ref):
        # ---- encoder: Linear(D_in -> D_hid), MXU in compute_dtype, f32 acc ----
        x = x_ref[...].astype(compute_dtype)
        we = we_ref[...].astype(compute_dtype)
        h = jnp.dot(x, we, preferred_element_type=jnp.float32) + be_ref[...]

        # ---- optional F.normalize(p=2, dim=1), f32 on VPU/EUP ----
        if normalize_flag:
            sumsq = jnp.sum(h * h, axis=1, keepdims=True)
            # torch: h / max(||h||, 1e-12)  ==  h * rsqrt(max(sumsq, 1e-24))
            inv = jax.lax.rsqrt(jnp.maximum(sumsq, 1e-24))
            h = h * inv

        # ---- decoder: Linear(D_hid -> D_out) ----
        hd = h.astype(compute_dtype)
        wd = wd_ref[...].astype(compute_dtype)
        out = jnp.dot(hd, wd, preferred_element_type=jnp.float32) + bd_ref[...]
        out_ref[...] = out.astype(out_ref.dtype)

    return enc_dec_kernel


def _pick_tile_b(B, Dp_in, Dp_hid, Dp_out, in_bytes, budget_bytes):
    """Largest batch tile (multiple of 8) whose working set fits the budget."""
    for tb in (1024, 512, 256, 128, 64, 32, 16, 8):
        need = (
            2 * tb * Dp_in * in_bytes            # double-buffered x tiles
            + 2 * tb * Dp_out * 4                # double-buffered out tiles
            + 2 * (Dp_in * Dp_hid + Dp_hid * Dp_out) * in_bytes   # weights (x2 bufs)
            + 2 * (Dp_hid + Dp_out) * 4          # biases
            + tb * Dp_hid * 4                    # intermediate h (f32)
            + tb * Dp_out * 4                    # f32 result before cast
        )
        if need <= budget_bytes:
            return min(tb, _round_up(B, 8))
    return 8


@functools.partial(jax.jit, static_argnames=("normalize_flag", "compute_dtype"))
def encoder_decoder_forward(x, w_enc, b_enc, w_dec, b_dec, *,
                            normalize_flag=False,
                            compute_dtype=jnp.float32):
    """Forward pass of EncoderDecoder with Linear encoder/decoder.

    x:     (B, D_in)
    w_enc: (D_hid, D_in)   - PyTorch nn.Linear layout (out_features, in_features)
    b_enc: (D_hid,)
    w_dec: (D_out, D_hid)
    b_dec: (D_out,)
    """
    B, D_in = x.shape
    D_hid, _ = w_enc.shape
    D_out, _ = w_dec.shape

    # Pad feature dims to lane width (128); choose batch tile from VMEM budget.
    Dp_in = _round_up(D_in, 128)
    Dp_hid = _round_up(D_hid, 128)
    Dp_out = _round_up(D_out, 128)

    in_bytes = jnp.dtype(compute_dtype).itemsize
    # Conservative budget, safe on v5e/v6e (128 MiB) and v7x (64 MiB, 32 scoped).
    budget = 24 << 20
    tile_b = _pick_tile_b(B, Dp_in, Dp_hid, Dp_out, in_bytes, budget)
    Bp = _round_up(B, tile_b)
    grid = (Bp // tile_b,)

    # Zero-pad inputs / parameters (transpose weights to (in, out) for x @ W).
    x_p = jnp.pad(x, ((0, Bp - B), (0, Dp_in - D_in)))
    we_p = jnp.pad(w_enc.T, ((0, Dp_in - D_in), (0, Dp_hid - D_hid)))
    wd_p = jnp.pad(w_dec.T, ((0, Dp_hid - D_hid), (0, Dp_out - D_out)))
    be_p = jnp.pad(b_enc.reshape(1, -1).astype(jnp.float32),
                   ((0, 0), (0, Dp_hid - D_hid)))
    bd_p = jnp.pad(b_dec.reshape(1, -1).astype(jnp.float32),
                   ((0, 0), (0, Dp_out - D_out)))

    kernel = _make_kernel(normalize_flag, compute_dtype)

    out_p = pl.pallas_call(
        kernel,
        out_shape=jax.ShapeDtypeStruct((Bp, Dp_out), x.dtype),
        grid=grid,
        in_specs=[
            pl.BlockSpec((tile_b, Dp_in), lambda i: (i, 0)),    # x tile (pipelined)
            pl.BlockSpec((Dp_in, Dp_hid), lambda i: (0, 0)),    # encoder weight (resident)
            pl.BlockSpec((1, Dp_hid), lambda i: (0, 0)),        # encoder bias
            pl.BlockSpec((Dp_hid, Dp_out), lambda i: (0, 0)),   # decoder weight (resident)
            pl.BlockSpec((1, Dp_out), lambda i: (0, 0)),        # decoder bias
        ],
        out_specs=pl.BlockSpec((tile_b, Dp_out), lambda i: (i, 0)),
        compiler_params=pltpu.CompilerParams(
            dimension_semantics=("parallel",),   # megacore split on v7x
            vmem_limit_bytes=32 << 20,
        ),
    )(x_p, we_p, be_p, wd_p, bd_p)

    return out_p[:B, :D_out]


def _reference_forward(x, w_enc, b_enc, w_dec, b_dec, normalize_flag):
    h = x @ w_enc.T + b_enc
    if normalize_flag:
        norm = jnp.sqrt(jnp.sum(h * h, axis=1, keepdims=True))
        h = h / jnp.maximum(norm, 1e-12)
    return h @ w_dec.T + b_dec


if __name__ == "__main__":
    # Small shapes consistent with the module's forward: x is (batch, features).
    B, D_IN, D_HID, D_OUT = 8, 32, 64, 32
    NORMALIZE = True

    key = jax.random.PRNGKey(0)
    k_x, k_we, k_be, k_wd, k_bd = jax.random.split(key, 5)

    x = jax.random.normal(k_x, (B, D_IN), dtype=jnp.float32)

    # Deterministic parameter init mimicking nn.Linear (uniform +/- 1/sqrt(fan_in)),
    # PyTorch layout: weight (out_features, in_features), bias (out_features,).
    bound_e = 1.0 / (D_IN ** 0.5)
    w_enc = jax.random.uniform(k_we, (D_HID, D_IN), jnp.float32, -bound_e, bound_e)
    b_enc = jax.random.uniform(k_be, (D_HID,), jnp.float32, -bound_e, bound_e)

    bound_d = 1.0 / (D_HID ** 0.5)
    w_dec = jax.random.uniform(k_wd, (D_OUT, D_HID), jnp.float32, -bound_d, bound_d)
    b_dec = jax.random.uniform(k_bd, (D_OUT,), jnp.float32, -bound_d, bound_d)

    ref = _reference_forward(x, w_enc, b_enc, w_dec, b_dec, NORMALIZE)

    # f32 MXU path: tight check against the reference.
    out_f32 = encoder_decoder_forward(
        x, w_enc, b_enc, w_dec, b_dec,
        normalize_flag=NORMALIZE, compute_dtype=jnp.float32)
    out_f32 = jax.block_until_ready(out_f32)
    assert out_f32.shape == (B, D_OUT)
    assert jnp.allclose(out_f32, ref, atol=1e-5, rtol=1e-5)

    # bf16 MXU path (recommended on v6e/v7x): looser tolerance.
    out_bf16 = encoder_decoder_forward(
        x, w_enc, b_enc, w_dec, b_dec,
        normalize_flag=NORMALIZE, compute_dtype=jnp.bfloat16)
    out_bf16 = jax.block_until_ready(out_bf16)
    assert out_bf16.shape == (B, D_OUT)
    assert jnp.allclose(out_bf16, ref, atol=5e-2, rtol=5e-2)

    print("KERNEL_OK")
</pallas_src>

<mosaic_0001>
module attributes {stable_mosaic.version = 11 : i64} {
  func.func @enc_dec_kernel(%arg0: i32, %arg1: memref<8x128xf32, #tpu.memory_space<vmem>>, %arg2: memref<128x128xf32, #tpu.memory_space<vmem>>, %arg3: memref<1x128xf32, #tpu.memory_space<vmem>>, %arg4: memref<128x128xf32, #tpu.memory_space<vmem>>, %arg5: memref<1x128xf32, #tpu.memory_space<vmem>>, %arg6: memref<8x128xf32, #tpu.memory_space<vmem>>) attributes {dimension_semantics = [#tpu.dimension_semantics<parallel>], iteration_bounds = array<i64: 1>, scalar_prefetch = 0 : i64, scratch_operands = 0 : i64, tpu.core_type = #tpu.core_type<tc>, window_params = [{transform_indices = @transform_0, window_bounds = array<i64: 8, 128>}, {pipeline_mode = #tpu.pipeline_mode<synchronous>, transform_indices = @transform_1, window_bounds = array<i64: 128, 128>}, {pipeline_mode = #tpu.pipeline_mode<synchronous>, transform_indices = @transform_2, window_bounds = array<i64: 1, 128>}, {pipeline_mode = #tpu.pipeline_mode<synchronous>, transform_indices = @transform_3, window_bounds = array<i64: 128, 128>}, {pipeline_mode = #tpu.pipeline_mode<synchronous>, transform_indices = @transform_4, window_bounds = array<i64: 1, 128>}, {transform_indices = @transform_5, window_bounds = array<i64: 8, 128>}]} {
    %c0 = arith.constant 0 : index
    %c0_0 = arith.constant 0 : index
    %0 = vector.load %arg1[%c0, %c0_0] : memref<8x128xf32, #tpu.memory_space<vmem>>, vector<8x128xf32>
    %c0_1 = arith.constant 0 : index
    %c0_2 = arith.constant 0 : index
    %1 = vector.load %arg2[%c0_1, %c0_2] : memref<128x128xf32, #tpu.memory_space<vmem>>, vector<128x128xf32>
    %cst = arith.constant dense<0.000000e+00> : vector<8x128xf32>
    %2 = tpu.matmul %0, %1, %cst {dimension_numbers = #tpu.dot_dimension_numbers<[1], [0], [0], [1], [0, 0, 1, 1], [], []>} : vector<8x128xf32>, vector<128x128xf32>, vector<8x128xf32> -> vector<8x128xf32>
    %c0_3 = arith.constant 0 : index
    %c0_4 = arith.constant 0 : index
    %3 = vector.load %arg3[%c0_3, %c0_4] : memref<1x128xf32, #tpu.memory_space<vmem>>, vector<1x128xf32>
    %4 = vector.broadcast %3 : vector<1x128xf32> to vector<8x128xf32>
    %5 = arith.addf %2, %4 : vector<8x128xf32>
    %6 = arith.mulf %5, %5 : vector<8x128xf32>
    %cst_5 = arith.constant dense<0.000000e+00> : vector<8xf32>
    %7 = vector.multi_reduction <add>, %6, %cst_5 [1] : vector<8x128xf32> to vector<8xf32>
    %8 = vector.shape_cast %7 : vector<8xf32> to vector<8x1xf32>
    %cst_6 = arith.constant 1.000000e-24 : f32
    %9 = vector.broadcast %cst_6 : f32 to vector<8x1xf32>
    %10 = arith.maximumf %8, %9 : vector<8x1xf32>
    %11 = math.rsqrt %10 : vector<8x1xf32>
    %12 = vector.broadcast %11 : vector<8x1xf32> to vector<8x128xf32>
    %13 = arith.mulf %5, %12 : vector<8x128xf32>
    %c0_7 = arith.constant 0 : index
    %c0_8 = arith.constant 0 : index
    %14 = vector.load %arg4[%c0_7, %c0_8] : memref<128x128xf32, #tpu.memory_space<vmem>>, vector<128x128xf32>
    %cst_9 = arith.constant dense<0.000000e+00> : vector<8x128xf32>
    %15 = tpu.matmul %13, %14, %cst_9 {dimension_numbers = #tpu.dot_dimension_numbers<[1], [0], [0], [1], [0, 0, 1, 1], [], []>} : vector<8x128xf32>, vector<128x128xf32>, vector<8x128xf32> -> vector<8x128xf32>
    %c0_10 = arith.constant 0 : index
    %c0_11 = arith.constant 0 : index
    %16 = vector.load %arg5[%c0_10, %c0_11] : memref<1x128xf32, #tpu.memory_space<vmem>>, vector<1x128xf32>
    %17 = vector.broadcast %16 : vector<1x128xf32> to vector<8x128xf32>
    %18 = arith.addf %15, %17 : vector<8x128xf32>
    %c0_12 = arith.constant 0 : index
    %c0_13 = arith.constant 0 : index
    %19 = vector.load %arg6[%c0_12, %c0_13] : memref<8x128xf32, #tpu.memory_space<vmem>>, vector<8x128xf32>
    tpu.vector_store %arg6[%c0_12, %c0_13], %18 {strides = array<i32>} : memref<8x128xf32, #tpu.memory_space<vmem>>, vector<8x128xf32>,
    return
  }
  func.func @transform_0(%arg0: i32) -> (i32, i32) {
    %c0_i32 = arith.constant 0 : i32
    %c0_i32_0 = arith.constant 0 : i32
    return %arg0, %c0_i32 : i32, i32
  }
  func.func @transform_1(%arg0: i32) -> (i32, i32) {
    %c0_i32 = arith.constant 0 : i32
    %c0_i32_0 = arith.constant 0 : i32
    %c0_i32_1 = arith.constant 0 : i32
    return %c0_i32, %c0_i32_0 : i32, i32
  }
  func.func @transform_2(%arg0: i32) -> (i32, i32) {
    %c0_i32 = arith.constant 0 : i32
    %c0_i32_0 = arith.constant 0 : i32
    %c0_i32_1 = arith.constant 0 : i32
    return %c0_i32, %c0_i32_0 : i32, i32
  }
  func.func @transform_3(%arg0: i32) -> (i32, i32) {
    %c0_i32 = arith.constant 0 : i32
    %c0_i32_0 = arith.constant 0 : i32
    %c0_i32_1 = arith.constant 0 : i32
    return %c0_i32, %c0_i32_0 : i32, i32
  }
  func.func @transform_4(%arg0: i32) -> (i32, i32) {
    %c0_i32 = arith.constant 0 : i32
    %c0_i32_0 = arith.constant 0 : i32
    %c0_i32_1 = arith.constant 0 : i32
    return %c0_i32, %c0_i32_0 : i32, i32
  }
  func.func @transform_5(%arg0: i32) -> (i32, i32) {
    %c0_i32 = arith.constant 0 : i32
    %c0_i32_0 = arith.constant 0 : i32
    return %arg0, %c0_i32 : i32, i32
  }
}

</mosaic_0001>

<bundles_post_ra>
// kernel: encoder_decoder_forward.1
= control target key start
LH: loop header
LB: loop body
LE: loop exit
PB: predicated region body
PF: predicated region fallthrough
CT: control target
= control target key end

     0   :  { %v362_v1 = vmov 0.0   ;;  %vm363_vm0 = vmmov 0   ;;  %s537_s0 = inlined_call_operand.vmem [shape: f32[8,128], index: 0, kind: input, shape index: {}]   ;;  %s538_s1 = inlined_call_operand.vmem [shape: f32[128,128], index: 1, kind: input, shape index: {}]   ;;  %s539_s2 = inlined_call_operand.vmem [shape: f32[1,128], index: 2, kind: input, shape index: {}]   ;;  %s540_s3 = inlined_call_operand.vmem [shape: f32[128,128], index: 3, kind: input, shape index: {}]   ;;  %s541_s4 = inlined_call_operand.vmem [shape: f32[1,128], index: 4, kind: input, shape index: {}]   ;;  %s542_s5 = inlined_call_operand.hbm [shape: f32[8,128], index: 5, kind: output, shape index: {}]  }
   0x1   :  { %v37_v0 = vld [vmem:[%s538_s1 + $0x78] sm:$0xff]  ;;  %265 = vmatprep.subr.mxu0 %v362_v1  ;;  %v36_v2 = vld [vmem:[%s538_s1 + $0x70] sm:$0xff]  ;;  %297 = vmatprep.mubr.msk.f32.mxu0 %vm363_vm0, %v362_v1  ;;  %v35_v3 = vld [vmem:[%s538_s1 + $0x68] sm:$0xff] }
   0x2   :  { %266 = vmatpush3.msra.mxu0 %v37_v0  ;;  %300 = vmatprep.subr.mxu1 %v362_v1  ;;  %v34_v4 = vld [vmem:[%s538_s1 + $0x60] sm:$0xff] }
   0x3   :  { %267 = vmatprep.subr.mxu0 %v362_v1  ;;  %332 = vmatprep.mubr.msk.f32.mxu1 %vm363_vm0, %v362_v1 }
   0x4   :  { %268 = vmatpush3.msra.mxu0 %v36_v2 }
   0x5   :  { %269 = vmatprep.subr.mxu0 %v362_v1 }
   0x6   :  { %270 = vmatpush3.msra.mxu0 %v35_v3 }
   0x7   :  { %10 = vsyncpa [#allocation3], 0  ;;  %271 = vmatprep.subr.mxu0 %v362_v1  ;;  %v33_v5 = vld [vmem:[%s538_s1 + $0x58] sm:$0xff]  ;;  %v32_v6 = vld [vmem:[%s538_s1 + $0x50] sm:$0xff]  ;;  %s364_s8 = smov [#allocation2]  }
   0x8   :  { %272 = vmatpush3.msra.mxu0 %v34_v4  ;;  %v31_v7 = vld [vmem:[%s538_s1 + $0x48] sm:$0xff]  ;;  %v30_v8 = vld [vmem:[%s538_s1 + $0x40] sm:$0xff]  ;;  %v29_v9 = vld [vmem:[%s538_s1 + $0x38] sm:$0xff]  ;;  %s221_s9 = sshll.u32 %s364_s8, 4  ;;  %s222_s9 = int_to_ptr.vmem [resolvable:$true] %s221_s9 }
   0x9   :  { %273 = vmatprep.subr.mxu0 %v362_v1  ;;  %v28_v10 = vld [vmem:[%s538_s1 + $0x30] sm:$0xff]  ;;  %v27_v11 = vld [vmem:[%s538_s1 + $0x28] sm:$0xff]  ;;  %v26_v12 = vld [vmem:[%s538_s1 + $0x20] sm:$0xff]  ;;  %p345_p1 = scmp.lt.s32.totalorder %s222_s9, %s222_s9 }
   0xa   :  { %274 = vmatpush3.msra.mxu0 %v33_v5  ;;  %v25_v13 = vld [vmem:[%s538_s1 + $0x18] sm:$0xff]  ;;  %v24_v14 = vld [vmem:[%s538_s1 + $0x10] sm:$0xff]  ;;  %v23_v15 = vld [vmem:[%s538_s1 + $0x8] sm:$0xff] }
   0xb   :  { %275 = vmatprep.subr.mxu0 %v362_v1  ;;  %v22_v16 = vld [vmem:[%s538_s1] sm:$0xff]  ;;  %v136_v18 = vld [vmem:[%s540_s3 + $0x78] sm:$0xff]  ;;  %v135_v19 = vld [vmem:[%s540_s3 + $0x70] sm:$0xff] }
   0xc   :  { %276 = vmatpush3.msra.mxu0 %v32_v6  ;;  %v21_v17 = vld [vmem:[%s537_s0] sm:$0xff]  ;;  %301 = vmatpush3.msra.mxu1 %v136_v18  ;;  %v134_v20 = vld [vmem:[%s540_s3 + $0x68] sm:$0xff]  ;;  %v132_v22 = vld [vmem:[%s540_s3 + $0x58] sm:$0xff] }
   0xd   :  { %277 = vmatprep.subr.mxu0 %v362_v1  ;;  %302 = vmatprep.subr.mxu1 %v362_v1  ;;  %v133_v21 = vld [vmem:[%s540_s3 + $0x60] sm:$0xff]  ;;  %v131_v23 = vld [vmem:[%s540_s3 + $0x50] sm:$0xff]  ;;  %v130_v29 = vld [vmem:[%s540_s3 + $0x48] sm:$0xff] }
   0xe   :  { %278 = vmatpush3.msra.mxu0 %v31_v7  ;;  %303 = vmatpush3.msra.mxu1 %v135_v19  ;;  %v229_v24 = vld [vmem:[%s539_s2] ss:$0 sm:$0xff]  ;;  %v128_v31 = vld [vmem:[%s540_s3 + $0x38] sm:$0xff]  ;;  %v127_v32 = vld [vmem:[%s540_s3 + $0x30] sm:$0xff] }
   0xf   :  { %279 = vmatprep.subr.mxu0 %v362_v1  ;;  %304 = vmatprep.subr.mxu1 %v362_v1  ;;  %v129_v30 = vld [vmem:[%s540_s3 + $0x40] sm:$0xff]  ;;  %v126_v33 = vld [vmem:[%s540_s3 + $0x28] sm:$0xff]  ;;  %v124_v35 = vld [vmem:[%s540_s3 + $0x18] sm:$0xff] }
  0x10   :  { %280 = vmatpush3.msra.mxu0 %v30_v8  ;;  %305 = vmatpush3.msra.mxu1 %v134_v20  ;;  %v125_v34 = vld [vmem:[%s540_s3 + $0x20] sm:$0xff]  ;;  %v123_v36 = vld [vmem:[%s540_s3 + $0x10] sm:$0xff]  ;;  %v122_v37 = vld [vmem:[%s540_s3 + $0x8] sm:$0xff] }
  0x11   :  { %281 = vmatprep.subr.mxu0 %v362_v1  ;;  %306 = vmatprep.subr.mxu1 %v362_v1  ;;  %v121_v38 = vld [vmem:[%s540_s3] sm:$0xff]  ;;  %s340_s3 = scalar_lea.vmem %s222_s9, 128 }
  0x12   :  { %282 = vmatpush3.msra.mxu0 %v29_v9  ;;  %307 = vmatpush3.msra.mxu1 %v133_v21  ;;  %v230_v43 = vld [vmem:[%s541_s4] ss:$0 sm:$0xff]  ;;  %p341_p0 = scmp.ne.s32.totalorder %s222_s9, %s340_s3  ;;  %p346_p2 = scmp.lt.s32.totalorder %s340_s3, %s340_s3 }
  0x13   :  { %283 = vmatprep.subr.mxu0 %v362_v1  ;;  %308 = vmatprep.subr.mxu1 %v362_v1 }
  0x14   :  { %284 = vmatpush3.msra.mxu0 %v28_v10  ;;  %309 = vmatpush3.msra.mxu1 %v132_v22  ;;  %p347_p3 = por %p346_p2, %p345_p1 }
  0x15   :  { %285 = vmatprep.subr.mxu0 %v362_v1  ;;  %310 = vmatprep.subr.mxu1 %v362_v1 }
  0x16   :  { %286 = vmatpush3.msra.mxu0 %v27_v11  ;;  %311 = vmatpush3.msra.mxu1 %v131_v23  ;;  %p348_p4 = pnand %p347_p3, %p341_p0 }
  0x17   :  { %287 = vmatprep.subr.mxu0 %v362_v1  ;;  %312 = vmatprep.subr.mxu1 %v362_v1 }
  0x18   :  { %288 = vmatpush3.msra.mxu0 %v26_v12  ;;  %313 = vmatpush3.msra.mxu1 %v130_v29 }
  0x19   :  { %289 = vmatprep.subr.mxu0 %v362_v1  ;;  %314 = vmatprep.subr.mxu1 %v362_v1 }
  0x1a   :  { %290 = vmatpush3.msra.mxu0 %v25_v13  ;;  %315 = vmatpush3.msra.mxu1 %v129_v30 }
  0x1b   :  { %291 = vmatprep.subr.mxu0 %v362_v1  ;;  %316 = vmatprep.subr.mxu1 %v362_v1 }
  0x1c   :  { %292 = vmatpush3.msra.mxu0 %v24_v14  ;;  %317 = vmatpush3.msra.mxu1 %v128_v31 }
  0x1d   :  { %293 = vmatprep.subr.mxu0 %v362_v1  ;;  %318 = vmatprep.subr.mxu1 %v362_v1 }
  0x1e   :  { %294 = vmatpush3.msra.mxu0 %v23_v15  ;;  %319 = vmatpush3.msra.mxu1 %v127_v32 }
  0x1f   :  { %295 = vmatprep.subr.mxu0 %v362_v1  ;;  %320 = vmatprep.subr.mxu1 %v362_v1 }
  0x20   :  { %296 = vmatpush3.msra.mxu0 %v22_v16  ;;  %321 = vmatpush3.msra.mxu1 %v126_v33 }
  0x21   :  { %298 = vmatmul.mubr.f32.vlgmr.msra.gmra.mxu0 %v21_v17  ;;  %322 = vmatprep.subr.mxu1 %v362_v1 }
  0x22   :  { %323 = vmatpush3.msra.mxu1 %v125_v34 }
  0x23   :  { %324 = vmatprep.subr.mxu1 %v362_v1 }
  0x24   :  { %325 = vmatpush3.msra.mxu1 %v124_v35 }
  0x25   :  { %326 = vmatprep.subr.mxu1 %v362_v1 }
  0x26   :  { %327 = vmatpush3.msra.mxu1 %v123_v36 }
  0x27   :  { %328 = vmatprep.subr.mxu1 %v362_v1 }
  0x28   :  { %329 = vmatpush3.msra.mxu1 %v122_v37 }
  0x29   :  { %330 = vmatprep.subr.mxu1 %v362_v1 }
  0x2a   :  { %331 = vmatpush3.msra.mxu1 %v121_v38 }
  0xe1   :  { %v111_v25 = vpop.f32.mrf.mxu0 }
  0xe2   :  { %v112_v26 = vadd.f32 %v229_v24, %v111_v25 }
  0xe3   :  { %v299_v27 = vpop.f32.mrf.mxu0 }
  0xe4   :  { %v115_v28 = vmul.f32 %v112_v26, %v112_v26 }
  0xe6   :  { %116 = vadd.xlane.f32.xlu0 %v115_v28 }
 0x16f   :  { %v117_v39 = vpop.xlane.xlu0 %116 }
 0x170   :  { %v118_v40 = vmax.f32 %v117_v39, 1e-24 }
 0x172   :  { %338 = vrsqrt.f32 %v118_v40 }
 0x17f   :  { %v339_v41 = vpop.eup %338 }
 0x180   :  { %v120_v42 = vmul.f32 %v339_v41, %v112_v26 }
 0x182   :  { %333 = vmatmul.mubr.f32.vlgmr.msra.gmra.mxu1 %v120_v42 }
 0x242   :  { %v210_v44 = vpop.f32.mrf.mxu1 }
 0x243   :  { %v211_v45 = vadd.f32 %v230_v43, %v210_v44 }
 0x244   :  { %v334_v46 = vpop.f32.mrf.mxu1 }
 0x245   :  { %214 = vst [vmem:[#allocation2] sm:$0xff] %v211_v45 }
 0x246   :  { %351 = shalt.err (!%p348_p4)
}
 0x247   :  { %224 = dma.vmem_to_hbm [thread:$0]  %s222_s9, 128, %s542_s5, [#allocation3]  }
 0x248   :  { %360 = dma.done.wait [#allocation3], 128  }
 0x249   :  { %361 = vsyncadd [#allocation3], 4294967168 }
 0x24a   :  { %228 = vsyncpa [#allocation3], 1 }

</bundles_post_ra>
